<compile_context>
chip_gen: v7x
topology: tpu7x:2x2x1
jax: 0.10.0
libtpu: 0.0.40
codegen_flags: <defaults>
</compile_context>

<pallas_src>
import jax
import jax.numpy as jnp
from jax.experimental import pallas as pl
from jax.experimental.pallas import tpu as pltpu


def _make_pam_kernel(c, tn, n_jb):
    def pam_kernel(xaug_ref, xcol_ref, o_ref, acc_ref):
        # xaug_ref: (c+1, hw)  [X ; ones] -- resident for the whole batch elem
        # xcol_ref: (c, tn)    column tile of X for this grid step
        # o_ref:    (c, hw)    output, written once at the last column step
        # acc_ref:  (c+1, hw)  f32 scratch: rows 0..c-1 = unnormalized X @ E,
        #                      row c = column sums of E
        jb = pl.program_id(1)

        x_lhs = xaug_ref[pl.ds(0, c), :]        # (c, hw), native dtype
        x_col = xcol_ref[...]                   # (c, tn), native dtype

        # A[:, cols] = X^T @ X[:, cols] : contract over the channel axis (MXU),
        # accumulate in f32 without upcasting the operands.
        a_tile = jax.lax.dot_general(
            x_lhs, x_col,
            dimension_numbers=(((0,), (0,)), ((), ())),
            preferred_element_type=jnp.float32,
        )                                        # (hw, tn) f32
        e_tile = jnp.exp(a_tile)                 # EUP transcendental, f32

        # [X ; 1] @ E_tile: rows 0..c-1 -> unnormalized output columns,
        # row c -> column sums of E (global-sum work moved onto the MXU).
        x_aug = xaug_ref[...]
        if x_aug.dtype == jnp.bfloat16:
            e_mm = e_tile.astype(jnp.bfloat16)   # full-rate bf16 MXU (v6e/v7x)
        else:
            e_mm = e_tile
        oa_tile = jnp.dot(x_aug, e_mm, preferred_element_type=jnp.float32)

        col0 = pl.multiple_of(jb * tn, tn)
        acc_ref[:, pl.ds(col0, tn)] = oa_tile    # disjoint columns per step

        @pl.when(jb == n_jb - 1)
        def _():
            col_sums = acc_ref[pl.ds(c, 1), :]                 # (1, hw)
            s = jnp.sum(col_sums, keepdims=True)               # (1, 1) total
            # Single scalar reciprocal; exact keeps the 1e-4 tolerance
            # (approx=True would be equally fine performance-wise).
            inv = pl.reciprocal(s, approx=False)
            out = acc_ref[pl.ds(0, c), :] * inv                # (c, hw)
            o_ref[...] = out.astype(o_ref.dtype)

    return pam_kernel


def _pick_tn(hw):
    # Budget the (hw, tn) f32 E tile to ~8 MiB so the kernel fits comfortably
    # inside the 16/32 MiB scoped-VMEM defaults (v5e / v6e / v7x) with room
    # for double-buffered inputs and the (c+1, hw) accumulator.
    budget = 8 * 1024 * 1024
    for tn in (2048, 1024, 512, 256, 128):
        if hw % tn == 0 and hw * tn * 4 <= budget:
            return tn
    # TODO(synk): pad/mask column tiles when hw is not a multiple of 128
    # (e.g. 56x56 feature maps); for now fall back to a single full tile.
    return hw


def pam_forward(img, tn=None):
    b, c, h, w = img.shape
    hw = h * w
    x = img.reshape(b, c, hw)
    if tn is None:
        tn = _pick_tn(hw)
    assert hw % tn == 0
    n_jb = hw // tn

    # Append a row of ones so the second matmul also produces column sums of E.
    x_aug = jnp.concatenate([x, jnp.ones((b, 1, hw), x.dtype)], axis=1)

    kernel = _make_pam_kernel(c, tn, n_jb)

    out_flat = pl.pallas_call(
        kernel,
        out_shape=jax.ShapeDtypeStruct((b, c, hw), img.dtype),
        grid_spec=pltpu.PrefetchScalarGridSpec(
            num_scalar_prefetch=0,
            grid=(b, n_jb),
            in_specs=[
                # [X ; 1] resident per batch element (same block across jb)
                pl.BlockSpec((pl.Squeezed(), c + 1, hw), lambda i, j: (i, 0, 0)),
                # column tile of X, drives the column-tile grid axis
                pl.BlockSpec((pl.Squeezed(), c, tn), lambda i, j: (i, 0, j)),
            ],
            out_specs=pl.BlockSpec((pl.Squeezed(), c, hw), lambda i, j: (i, 0, 0)),
            scratch_shapes=[pltpu.VMEM((c + 1, hw), jnp.float32)],
        ),
        compiler_params=pltpu.CompilerParams(
            dimension_semantics=("parallel", "arbitrary"),
            vmem_limit_bytes=32 * 1024 * 1024,
        ),
    )(x_aug, x)

    return out_flat.reshape(b, c, h, w)


def pam_reference(img):
    # Pure-JAX reference mirroring the PyTorch code.
    b, c, h, w = img.shape
    f = img.reshape(b, c, h * w).astype(jnp.float32)
    temp = jnp.exp(jnp.einsum("bci,bcj->bij", f, f))
    temp = temp / jnp.sum(temp, axis=(1, 2), keepdims=True)
    out = jnp.einsum("bck,bkj->bcj", f, temp)
    return out.reshape(b, c, h, w).astype(img.dtype)


if __name__ == "__main__":
    key = jax.random.PRNGKey(0)
    # small shapes consistent with an NCHW conv feature map
    b, c, h, w = 2, 4, 16, 16
    img = jax.random.normal(key, (b, c, h, w), dtype=jnp.float32)

    ref = pam_reference(img)

    # Default column tile (single tile at hw=256).
    out = jax.block_until_ready(pam_forward(img))
    assert out.shape == (b, c, h, w)
    assert jnp.allclose(out, ref, atol=1e-4, rtol=1e-4), "mismatch vs reference"

    # Force two column tiles to exercise the accumulate-then-normalize path.
    out_tiled = jax.block_until_ready(pam_forward(img, tn=128))
    assert jnp.allclose(out_tiled, ref, atol=1e-4, rtol=1e-4), "tiled mismatch"

    print("KERNEL_OK")
</pallas_src>

<mosaic_0001>
module attributes {stable_mosaic.version = 11 : i64} {
  func.func @pam_kernel(%arg0: i32, %arg1: i32, %arg2: memref<1x5x256xf32, #tpu.memory_space<vmem>>, %arg3: memref<1x4x256xf32, #tpu.memory_space<vmem>>, %arg4: memref<1x4x256xf32, #tpu.memory_space<vmem>>, %arg5: memref<5x256xf32, #tpu.memory_space<vmem>>) attributes {dimension_semantics = [#tpu.dimension_semantics<parallel>, #tpu.dimension_semantics<arbitrary>], iteration_bounds = array<i64: 2, 1>, scalar_prefetch = 0 : i64, scratch_operands = 1 : i64, tpu.core_type = #tpu.core_type<tc>, window_params = [{transform_indices = @transform_0, window_bounds = array<i64: 1, 5, 256>}, {transform_indices = @transform_1, window_bounds = array<i64: 1, 4, 256>}, {transform_indices = @transform_2, window_bounds = array<i64: 1, 4, 256>}]} {
    %c0 = arith.constant 0 : index
    %c0_0 = arith.constant 0 : index
    %c0_1 = arith.constant 0 : index
    %0 = vector.load %arg2[%c0, %c0_0, %c0_1] : memref<1x5x256xf32, #tpu.memory_space<vmem>>, vector<1x4x256xf32>
    %1 = vector.shape_cast %0 : vector<1x4x256xf32> to vector<4x256xf32>
    %c0_2 = arith.constant 0 : index
    %c0_3 = arith.constant 0 : index
    %c0_4 = arith.constant 0 : index
    %2 = vector.load %arg3[%c0_2, %c0_3, %c0_4] : memref<1x4x256xf32, #tpu.memory_space<vmem>>, vector<1x4x256xf32>
    %3 = vector.shape_cast %2 : vector<1x4x256xf32> to vector<4x256xf32>
    %cst = arith.constant dense<0.000000e+00> : vector<256x256xf32>
    %4 = tpu.matmul %1, %3, %cst {dimension_numbers = #tpu.dot_dimension_numbers<[0], [0], [1], [1], [0, 1, 1, 1], [], []>} : vector<4x256xf32>, vector<4x256xf32>, vector<256x256xf32> -> vector<256x256xf32>
    %5 = math.exp %4 : vector<256x256xf32>
    %c0_5 = arith.constant 0 : index
    %c0_6 = arith.constant 0 : index
    %c0_7 = arith.constant 0 : index
    %6 = vector.load %arg2[%c0_5, %c0_6, %c0_7] : memref<1x5x256xf32, #tpu.memory_space<vmem>>, vector<1x5x256xf32>
    %7 = vector.shape_cast %6 : vector<1x5x256xf32> to vector<5x256xf32>
    %cst_8 = arith.constant dense<0.000000e+00> : vector<5x256xf32>
    %8 = tpu.matmul %7, %5, %cst_8 {dimension_numbers = #tpu.dot_dimension_numbers<[1], [0], [0], [1], [0, 0, 1, 1], [], []>} : vector<5x256xf32>, vector<256x256xf32>, vector<5x256xf32> -> vector<5x256xf32>
    %c256_i32 = arith.constant 256 : i32
    %9 = arith.muli %arg1, %c256_i32 : i32
    %10 = tpu.assume_multiple %9, 256 : i32
    %c0_9 = arith.constant 0 : index
    %11 = arith.index_cast %10 : i32 to index
    %12 = vector.load %arg5[%c0_9, %11] : memref<5x256xf32, #tpu.memory_space<vmem>>, vector<5x256xf32>
    tpu.vector_store %arg5[%c0_9, %11], %8 {strides = array<i32>} : memref<5x256xf32, #tpu.memory_space<vmem>>, vector<5x256xf32>,
    %c0_i32 = arith.constant 0 : i32
    %13 = arith.cmpi eq, %arg1, %c0_i32 : i32
    %14 = arith.extui %13 : i1 to i32
    %c0_i32_10 = arith.constant 0 : i32
    %15 = arith.cmpi ne, %14, %c0_i32_10 : i32
    scf.if %15 {
      %c4 = arith.constant 4 : index
      %c0_11 = arith.constant 0 : index
      %16 = vector.load %arg5[%c4, %c0_11] : memref<5x256xf32, #tpu.memory_space<vmem>>, vector<1x256xf32>
      %17 = vector.shape_cast %16 : vector<1x256xf32> to vector<1x1x256xf32>
      %cst_12 = arith.constant dense<0.000000e+00> : vector<1xf32>
      %18 = vector.multi_reduction <add>, %17, %cst_12 [1, 2] : vector<1x1x256xf32> to vector<1xf32>
      %19 = vector.shape_cast %18 : vector<1xf32> to vector<1x1x1xf32>
      %20 = vector.extract %19[0, 0, 0] : f32 from vector<1x1x1xf32>
      %21 = vector.broadcast %20 : f32 to vector<1x1xf32>
      %22 = tpu.reciprocal %21 : vector<1x1xf32> -> vector<1x1xf32>
      %c0_13 = arith.constant 0 : index
      %c0_14 = arith.constant 0 : index
      %23 = vector.load %arg5[%c0_13, %c0_14] : memref<5x256xf32, #tpu.memory_space<vmem>>, vector<4x256xf32>
      %24 = vector.broadcast %22 : vector<1x1xf32> to vector<4x256xf32>
      %25 = arith.mulf %23, %24 : vector<4x256xf32>
      %c0_15 = arith.constant 0 : index
      %c0_16 = arith.constant 0 : index
      %c0_17 = arith.constant 0 : index
      %26 = vector.load %arg4[%c0_15, %c0_16, %c0_17] : memref<1x4x256xf32, #tpu.memory_space<vmem>>, vector<1x4x256xf32>
      %27 = vector.shape_cast %26 : vector<1x4x256xf32> to vector<4x256xf32>
      %28 = vector.shape_cast %25 : vector<4x256xf32> to vector<1x4x256xf32>
      tpu.vector_store %arg4[%c0_15, %c0_16, %c0_17], %28 {strides = array<i32>} : memref<1x4x256xf32, #tpu.memory_space<vmem>>, vector<1x4x256xf32>,
    } else {
    }
    return
  }
  func.func @transform_0(%arg0: i32, %arg1: i32) -> (i32, i32, i32) {
    %c0_i32 = arith.constant 0 : i32
    %c0_i32_0 = arith.constant 0 : i32
    %c0_i32_1 = arith.constant 0 : i32
    return %arg0, %c0_i32, %c0_i32_0 : i32, i32, i32
  }
  func.func @transform_1(%arg0: i32, %arg1: i32) -> (i32, i32, i32) {
    %c0_i32 = arith.constant 0 : i32
    %c0_i32_0 = arith.constant 0 : i32
    return %arg0, %c0_i32, %arg1 : i32, i32, i32
  }
  func.func @transform_2(%arg0: i32, %arg1: i32) -> (i32, i32, i32) {
    %c0_i32 = arith.constant 0 : i32
    %c0_i32_0 = arith.constant 0 : i32
    %c0_i32_1 = arith.constant 0 : i32
    return %arg0, %c0_i32, %c0_i32_0 : i32, i32, i32
  }
}

</mosaic_0001>

<bundles_post_ra>
// kernel: tpu_custom_call.1
= control target key start
LH: loop header
LB: loop body
LE: loop exit
PB: predicated region body
PF: predicated region fallthrough
CT: control target
= control target key end

     0   :  { %7 = vsyncpa [#allocation4], 0  ;;  %s1556_s0 = inlined_call_operand.vmem [shape: f32[2,5,256], index: 0, kind: input, shape index: {}]   ;;  %s1557_s1 = inlined_call_operand.vmem [shape: f32[2,4,256], index: 1, kind: input, shape index: {}]   ;;  %s1558_s2 = inlined_call_operand.hbm [shape: f32[2,4,256], index: 2, kind: output, shape index: {}]  }
   0x1   :  { %9 = vsyncpa [#allocation4 + $0x1], 0  ;;  %s1371_s9 = smov 0   ;;  %s1373_s10 = smov 0  }
   0x2   :  { %s1375_s11 = smov 0   ;;  %s1377_s12 = smov 0  }
   0x3   :  { %s1379_s13 = smov 0   ;;  %s1381_s14 = smov 0  }
   0x4 LB: > { %s969_s15 = sadd.s32 4294967295, %s1352_s14   ;;  %s970_s16 = sadd.s32 4294967294, %s1352_s14   ;;  %s1352_s14 = sphi %s1381_s14, %s15_s14   ;;  %s1348_s13 = sphi %s1379_s13, %s1565_s13   ;;  %s1344_s12 = sphi %s1377_s12, %s1564_s12   ;;  %s1340_s11 = sphi %s1375_s11, %s1563_s11   ;;  %s1336_s10 = sphi %s1373_s10, %s1562_s10   ;;  %s1332_s9 = sphi %s1371_s9, %s1561_s9  }
   0x5   : > { %s27_s17 = sadd.s32 1, %s1348_s13  ;;  %s88_s18 = sadd.s32 1, %s1340_s11 }
   0x6   : > { %p29_p0 = scmp.ge.s32.totalorder %s27_s17, 2  ;;  %p98_p1 = scmp.ne.s32.totalorder %s1340_s11, %s1336_s10 }
   0x7   : > { %p99_p2 = scmp.eq.s32.totalorder %s969_s15, 1  ;;  %p104_p3 = scmp.ne.s32.totalorder %s1336_s10, %s1332_s9 }
   0x8   : > { %s1567_s17 = smov (%p29_p0, %s27_s17), 0  ;;  %p105_p5 = scmp.eq.s32.totalorder %s970_s16, 1 }
   0x9   : > { %p1411_p4 = por %p99_p2, %p98_p1  ;;  %s85_s20 = ssub.s32 %s1348_s13, %s1567_s17 }
   0xa   : > { %p973_p6 = scmp.ge.s32.totalorder %s1352_s14, 1  ;;  %p86_p7 = scmp.eq.s32.totalorder %s85_s20, 0 }
   0xb   : > { %p1418_p8 = por %p105_p5, %p104_p3  ;;  %p144_p9 = scmp.lt.s32.totalorder %s1352_s14, 3 }
   0xc   : > { %s1424_s22 = scalar_select %p86_p7, %s1340_s11, %s88_s18  }
   0xd   : > { %p145_p10 = pnand %p973_p6, %p144_p9 }
   0xe   : > { %p175_p11 = scmp.lt.s32.totalorder (!%p145_p10), %s1344_s12, 1  ;;  %v1354_v0 = vmov (!%p145_p10), 0.0   ;;  %vm356_vm0 = vcmask (!%p145_p10), 1043456   ;;  %vm259_vm1 = vcmask (!%p145_p10), 31744   ;;  %vm843_vm2 = vcmask (!%p145_p10), 1040384   ;;  %s172_s5 = sand.u32 (!%p145_p10), 1, %s1336_s10  }
   0xf   : > { %148 = sbr.rel (%p145_p10) target bundleno = 972 (0x3cc), region = 28  ;;  %425 = vmatprep.mubr.f32.mxu0 (!%p145_p10), %v1354_v0  ;;  %s974_s6 = sshll.u32 (!%p145_p10), %s172_s5, 3 }
  0x10   : > { %s1020_s7 = sshll.u32 (!%p145_p10), %s1344_s12, 7  ;;  %s174_s8 = scalar_lea.vmem (!%p145_p10), [#allocation3], %s974_s6 }
  0x11   : > { %s882_s15 = sshll.u32 (!%p145_p10), %s174_s8, 4  ;;  %s1509_s20 = scalar_lea.hbm (!%p145_p10), %s1558_s2, %s1020_s7  ;;  %s1511_s15 = int_to_ptr.vmem [resolvable:$true] %s882_s15 }
  0x16   : > { %s176_s23 = scalar_select %p175_p11, %s1344_s12, 1 }
  0x17   : > { %s1355_s12 = smov [#allocation3]  }
  0x18   : > { %s1018_s24 = sshll.u32 %s176_s23, 4  ;;  %s1019_s25 = sshll.u32 %s176_s23, 3 }
  0x19   : > { %s1432_s28 = scalar_lea.vmem %s1556_s0, %s1018_s24  ;;  %s188_s3 = scalar_lea.vmem %s1557_s1, %s1019_s25 }
  0x1a   : > { %v190_v1 = vld [vmem:[%s1432_s28] sm:$0xf]  ;;  %v191_v4 = vld [vmem:[%s1432_s28 + $0x8] sm:$0xf]  ;;  %s868_s23 = scalar_lea.sflag [#allocation4], %s172_s5  ;;  %s1274_s24 = scalar_lea.vmem %s1511_s15, 128 }
  0x1b   : > { %v192_v2 = vld [vmem:[%s188_s3] sm:$0xff]  ;;  %193 = vxpose.xlu0.b32.start.end [1/1] (short) %v190_v1, 128  ;;  %v747_v53 = vld [vmem:[%s1432_s28 + $0x8] sm:$0x1f]  ;;  %p1275_p12 = scmp.ne.s32.totalorder %s1511_s15, %s1274_s24  ;;  %s1278_s25 = sshll.u32 %s1355_s12, 4  ;;  %s1279_s25 = int_to_ptr.vmem [resolvable:$false] %s1278_s25 }
  0x1c   : > { %v258_v3 = vcombine.high %v192_v2, %v192_v2  ;;  %812 = vmatprep.mubr.f32.mxu1 %v747_v53  ;;  %s1280_s26 = scalar_lea.vmem %s1279_s25, 256  ;;  %p1281_p1 = scmp.lt.s32.totalorder %s1511_s15, %s1279_s25 }
  0x1d   : > { %p1276_p13 = pnand %p1275_p12, %p1411_p4  ;;  %p1282_p2 = scmp.lt.s32.totalorder %s1280_s26, %s1274_s24 }
  0x1e   : > { %979 = vmatprep.subr.msk.mxu0 %vm356_vm0, %v258_v3 }
  0x1f   : > { %980 = vmatpush1.msk.msra.mxu0 %vm356_vm0, %v192_v2  ;;  %p1277_p0 = pneg %p1276_p13  ;;  %p1283_p3 = por %p1282_p2, %p1281_p1 }
  0x21   : > { %p1284_p5 = pnand %p1283_p3, %p1277_p0 }
  0x58   : > { %225 = vxpose.xlu0.b32.start.end [1/1] (short) %v191_v4, 128 }
  0x9b   : > { %v209_v5 = vpop.trf.xlu0 }
  0x9c   : > { %981 = vmatmul.mubr.msk.f32.vlgmr.msra.gmra.mrb[0].mxu0 %vm259_vm1, %v209_v5 }
  0x9d   : > { %431 = vmatprep.mubr.f32.mxu0 %v1354_v0 }
  0x9f   : > { %v210_v6 = vpop.trf.xlu0 }
  0xa0   : > { %982 = vmatmul.mubr.msk.f32.gmra.mrb[2].mxu0 %vm259_vm1, %v210_v6 }
  0xa1   : > { %437 = vmatprep.mubr.f32.mxu0 %v1354_v0 }
  0xa3   : > { %v211_v7 = vpop.trf.xlu0 }
  0xa4   : > { %983 = vmatmul.mubr.msk.f32.gmra.mrb[4].mxu0 %vm259_vm1, %v211_v7 }
  0xa5   : > { %443 = vmatprep.mubr.f32.mxu0 %v1354_v0 }
  0xa7   : > { %v212_v8 = vpop.trf.xlu0 }
  0xa8   : > { %984 = vmatmul.mubr.msk.f32.gmra.mrb[6].mxu0 %vm259_vm1, %v212_v8 }
  0xa9   : > { %449 = vmatprep.mubr.f32.mxu0 %v1354_v0 }
  0xab   : > { %v213_v9 = vpop.trf.xlu0 }
  0xac   : > { %985 = vmatmul.mubr.msk.f32.gmra.mrb[8].mxu0 %vm259_vm1, %v213_v9 }
  0xad   : > { %455 = vmatprep.mubr.f32.mxu0 %v1354_v0 }
  0xaf   : > { %v214_v10 = vpop.trf.xlu0 }
  0xb0   : > { %986 = vmatmul.mubr.msk.f32.gmra.mrb[10].mxu0 %vm259_vm1, %v214_v10 }
  0xb1   : > { %461 = vmatprep.mubr.f32.mxu0 %v1354_v0 }
  0xb3   : > { %v215_v11 = vpop.trf.xlu0 }
  0xb4   : > { %987 = vmatmul.mubr.msk.f32.gmra.mrb[12].mxu0 %vm259_vm1, %v215_v11 }
  0xb5   : > { %467 = vmatprep.mubr.f32.mxu0 %v1354_v0 }
  0xb7   : > { %v216_v12 = vpop.trf.xlu0 }
  0xb8   : > { %988 = vmatmul.mubr.msk.f32.gmra.mrb[14].mxu0 %vm259_vm1, %v216_v12 }
  0xb9   : > { %473 = vmatprep.mubr.f32.mxu0 %v1354_v0 }
  0xbb   : > { %v217_v13 = vpop.trf.xlu0 }
  0xbc   : > { %989 = vmatmul.mubr.msk.f32.gmra.mrb[16].mxu0 %vm259_vm1, %v217_v13 }
  0xbd   : > { %479 = vmatprep.mubr.f32.mxu0 %v1354_v0 }
  0xbf   : > { %v218_v14 = vpop.trf.xlu0 }
  0xc0   : > { %990 = vmatmul.mubr.msk.f32.gmra.mrb[18].mxu0 %vm259_vm1, %v218_v14 }
  0xc1   : > { %485 = vmatprep.mubr.f32.mxu0 %v1354_v0 }
  0xc3   : > { %v219_v15 = vpop.trf.xlu0 }
  0xc4   : > { %991 = vmatmul.mubr.msk.f32.gmra.mrb[20].mxu0 %vm259_vm1, %v219_v15 }
  0xc5   : > { %491 = vmatprep.mubr.f32.mxu0 %v1354_v0 }
  0xc7   : > { %v220_v16 = vpop.trf.xlu0 }
  0xc8   : > { %992 = vmatmul.mubr.msk.f32.gmra.mrb[22].mxu0 %vm259_vm1, %v220_v16 }
  0xc9   : > { %497 = vmatprep.mubr.f32.mxu0 %v1354_v0 }
  0xcb   : > { %v221_v17 = vpop.trf.xlu0 }
  0xcc   : > { %993 = vmatmul.mubr.msk.f32.gmra.mrb[24].mxu0 %vm259_vm1, %v221_v17 }
  0xcd   : > { %503 = vmatprep.mubr.f32.mxu0 %v1354_v0 }
  0xcf   : > { %v222_v18 = vpop.trf.xlu0 }
  0xd0   : > { %994 = vmatmul.mubr.msk.f32.gmra.mrb[26].mxu0 %vm259_vm1, %v222_v18 }
  0xd1   : > { %509 = vmatprep.mubr.f32.mxu0 %v1354_v0 }
  0xd3   : > { %v223_v19 = vpop.trf.xlu0 }
  0xd4   : > { %995 = vmatmul.mubr.msk.f32.gmra.mrb[28].mxu0 %vm259_vm1, %v223_v19 }
  0xd5   : > { %515 = vmatprep.mubr.f32.mxu0 %v1354_v0 }
  0xd7   : > { %v224_v20 = vpop.trf.xlu0 }
  0xd8   : > { %996 = vmatmul.mubr.msk.f32.gmra.mrb[30].mxu0 %vm259_vm1, %v224_v20 }
  0xd9   : > { %521 = vmatprep.mubr.f32.mxu0 %v1354_v0 }
  0xdb   : > { %v241_v21 = vpop.trf.xlu0 }
  0xdc   : > { %997 = vmatmul.mubr.msk.f32.gmra.mrb[32].mxu0 %vm259_vm1, %v241_v21 }
  0xdd   : > { %527 = vmatprep.mubr.f32.mxu0 %v1354_v0 }
  0xdf   : > { %v242_v22 = vpop.trf.xlu0 }
  0xe0   : > { %998 = vmatmul.mubr.msk.f32.gmra.mrb[34].mxu0 %vm259_vm1, %v242_v22 }
  0xe1   : > { %533 = vmatprep.mubr.f32.mxu0 %v1354_v0 }
  0xe3   : > { %v243_v23 = vpop.trf.xlu0 }
  0xe4   : > { %999 = vmatmul.mubr.msk.f32.gmra.mrb[36].mxu0 %vm259_vm1, %v243_v23 }
  0xe5   : > { %539 = vmatprep.mubr.f32.mxu0 %v1354_v0 }
  0xe7   : > { %v244_v24 = vpop.trf.xlu0 }
  0xe8   : > { %1000 = vmatmul.mubr.msk.f32.gmra.mrb[38].mxu0 %vm259_vm1, %v244_v24 }
  0xe9   : > { %545 = vmatprep.mubr.f32.mxu0 %v1354_v0 }
  0xeb   : > { %v245_v25 = vpop.trf.xlu0 }
  0xec   : > { %1001 = vmatmul.mubr.msk.f32.gmra.mrb[40].mxu0 %vm259_vm1, %v245_v25 }
  0xed   : > { %551 = vmatprep.mubr.f32.mxu0 %v1354_v0 }
  0xef   : > { %v246_v26 = vpop.trf.xlu0 }
  0xf0   : > { %1002 = vmatmul.mubr.msk.f32.gmra.mrb[42].mxu0 %vm259_vm1, %v246_v26 }
  0xf1   : > { %557 = vmatprep.mubr.f32.mxu0 %v1354_v0 }
  0xf3   : > { %v247_v27 = vpop.trf.xlu0 }
  0xf4   : > { %1003 = vmatmul.mubr.msk.f32.gmra.mrb[44].mxu0 %vm259_vm1, %v247_v27 }
  0xf5   : > { %563 = vmatprep.mubr.f32.mxu0 %v1354_v0 }
  0xf7   : > { %v248_v28 = vpop.trf.xlu0 }
  0xf8   : > { %1004 = vmatmul.mubr.msk.f32.gmra.mrb[46].mxu0 %vm259_vm1, %v248_v28 }
  0xf9   : > { %569 = vmatprep.mubr.f32.mxu0 %v1354_v0 }
  0xfb   : > { %v249_v29 = vpop.trf.xlu0 }
  0xfc   : > { %1005 = vmatmul.mubr.msk.f32.gmra.mrb[48].mxu0 %vm259_vm1, %v249_v29 }
  0xfd   : > { %575 = vmatprep.mubr.f32.mxu0 %v1354_v0 }
  0xff   : > { %v250_v30 = vpop.trf.xlu0 }
 0x100   : > { %1006 = vmatmul.mubr.msk.f32.gmra.mrb[50].mxu0 %vm259_vm1, %v250_v30 }
 0x101   : > { %581 = vmatprep.mubr.f32.mxu0 %v1354_v0 }
 0x103   : > { %v251_v31 = vpop.trf.xlu0 }
 0x104   : > { %1007 = vmatmul.mubr.msk.f32.gmra.mrb[52].mxu0 %vm259_vm1, %v251_v31 }
 0x105   : > { %587 = vmatprep.mubr.f32.mxu0 %v1354_v0 }
 0x107   : > { %v252_v32 = vpop.trf.xlu0 }
 0x108   : > { %1008 = vmatmul.mubr.msk.f32.gmra.mrb[54].mxu0 %vm259_vm1, %v252_v32 }
 0x109   : > { %593 = vmatprep.mubr.f32.mxu0 %v1354_v0 }
 0x10b   : > { %v253_v33 = vpop.trf.xlu0 }
 0x10c   : > { %1009 = vmatmul.mubr.msk.f32.gmra.mrb[56].mxu0 %vm259_vm1, %v253_v33 }
 0x10d   : > { %599 = vmatprep.mubr.f32.mxu0 %v1354_v0 }
 0x10f   : > { %v254_v34 = vpop.trf.xlu0 }
 0x110   : > { %1010 = vmatmul.mubr.msk.f32.gmra.mrb[58].mxu0 %vm259_vm1, %v254_v34 }
 0x111   : > { %605 = vmatprep.mubr.f32.mxu0 %v1354_v0 }
 0x113   : > { %v255_v35 = vpop.trf.xlu0 }
 0x114   : > { %1011 = vmatmul.mubr.msk.f32.gmra.mrb[60].mxu0 %vm259_vm1, %v255_v35 }
 0x115   : > { %611 = vmatprep.mubr.f32.mxu0 %v1354_v0 }
 0x117   : > { %v256_v36 = vpop.trf.xlu0 }
 0x118   : > { %1012 = vmatmul.mubr.msk.f32.gmra.mrb[62].mxu0 %vm259_vm1, %v256_v36 }
 0x16f   : > { %v427_v37 = vpop.f32.mrb[0].mxu0 }
 0x170   : > { %v618_v38 = vmul.f32 1.442695, %v427_v37  ;;  %v429_v39 = vpop.f32.mrb[1].mxu0 }
 0x171   : > { %v620_v40 = vmul.f32 1.442695, %v429_v39 }
 0x172   : > { %1144 = vpow2.f32 %v618_v38 }
 0x173   : > { %v433_v41 = vpop.f32.mrb[2].mxu0  ;;  %1146 = vpow2.f32 %v620_v40 }
 0x174   : > { %v622_v42 = vmul.f32 1.442695, %v433_v41  ;;  %v435_v43 = vpop.f32.mrb[3].mxu0 }
 0x175   : > { %v624_v44 = vmul.f32 1.442695, %v435_v43 }
 0x176   : > { %1148 = vpow2.f32 %v622_v42 }
 0x177   : > { %1150 = vpow2.f32 %v624_v44  ;;  %v439_v45 = vpop.f32.mrb[4].mxu0 }
 0x178   : > { %v626_v46 = vmul.f32 1.442695, %v439_v45  ;;  %v441_v47 = vpop.f32.mrb[5].mxu0 }
 0x179   : > { %v628_v48 = vmul.f32 1.442695, %v441_v47 }
 0x17a   : > { %1152 = vpow2.f32 %v626_v46 }
 0x17b   : > { %v445_v49 = vpop.f32.mrb[6].mxu0  ;;  %1154 = vpow2.f32 %v628_v48 }
 0x17c   : > { %v630_v50 = vmul.f32 1.442695, %v445_v49  ;;  %v447_v51 = vpop.f32.mrb[7].mxu0  ;;  %v1145_v54 = vpop.eup %1144 }
 0x17d   : > { %v632_v52 = vmul.f32 1.442695, %v447_v51  ;;  %v1147_v55 = vpop.eup %1146 }
 0x17e   : > { %1156 = vpow2.f32 %v630_v50 }
 0x17f   : > { %1158 = vpow2.f32 %v632_v52  ;;  %v451_v56 = vpop.f32.mrb[8].mxu0 }
 0x180   : > { %v1149_v57 = vpop.eup %1148  ;;  %v634_v58 = vmul.f32 1.442695, %v451_v56  ;;  %v453_v59 = vpop.f32.mrb[9].mxu0 }
 0x181   : > { %v1151_v60 = vpop.eup %1150  ;;  %v636_v61 = vmul.f32 1.442695, %v453_v59  ;;  %v1023_v62 = vpack.c.bf16 %v1149_v57, %v1145_v54 }
 0x182   : > { %v1021_v63 = vpack.c.bf16 %v1151_v60, %v1147_v55  ;;  %1160 = vpow2.f32 %v634_v58 }
 0x183   : > { %v457_v0 = vpop.f32.mrb[10].mxu0  ;;  %1162 = vpow2.f32 %v636_v61 }
 0x184   : > { %v638_v1 = vmul.f32 1.442695, %v457_v0  ;;  %v459_v2 = vpop.f32.mrb[11].mxu0  ;;  %1022 = vmatprep.subr.bf16.mxu1 %v1021_v63  ;;  %v1153_v4 = vpop.eup %1152 }
 0x185   : > { %v640_v3 = vmul.f32 1.442695, %v459_v2  ;;  %1024 = vmatpush1.bf16.msra.mxu1 %v1023_v62  ;;  %v1155_v5 = vpop.eup %1154 }
 0x186   : > { %1164 = vpow2.f32 %v638_v1 }
 0x187   : > { %1166 = vpow2.f32 %v640_v3  ;;  %v463_v6 = vpop.f32.mrb[12].mxu0 }
 0x188   : > { %v1157_v7 = vpop.eup %1156  ;;  %v642_v8 = vmul.f32 1.442695, %v463_v6  ;;  %v465_v9 = vpop.f32.mrb[13].mxu0 }
 0x189   : > { %v1159_v10 = vpop.eup %1158  ;;  %v644_v11 = vmul.f32 1.442695, %v465_v9  ;;  %v1027_v12 = vpack.c.bf16 %v1157_v7, %v1153_v4 }
 0x18a   : > { %v1025_v13 = vpack.c.bf16 %v1159_v10, %v1155_v5  ;;  %1168 = vpow2.f32 %v642_v8 }
 0x18b   : > { %v469_v14 = vpop.f32.mrb[14].mxu0  ;;  %1170 = vpow2.f32 %v644_v11 }
 0x18c   : > { %v646_v15 = vmul.f32 1.442695, %v469_v14  ;;  %v471_v16 = vpop.f32.mrb[15].mxu0  ;;  %1026 = vmatprep.subr.bf16.mxu1 %v1025_v13  ;;  %v1161_v18 = vpop.eup %1160 }
 0x18d   : > { %v648_v17 = vmul.f32 1.442695, %v471_v16  ;;  %1028 = vmatpush1.bf16.msra.mxu1 %v1027_v12  ;;  %v1163_v19 = vpop.eup %1162 }
 0x18e   : > { %1172 = vpow2.f32 %v646_v15 }
 0x18f   : > { %1174 = vpow2.f32 %v648_v17  ;;  %v475_v20 = vpop.f32.mrb[16].mxu0 }
 0x190   : > { %v1165_v21 = vpop.eup %1164  ;;  %v650_v22 = vmul.f32 1.442695, %v475_v20  ;;  %v477_v23 = vpop.f32.mrb[17].mxu0 }
 0x191   : > { %v1167_v24 = vpop.eup %1166  ;;  %v652_v25 = vmul.f32 1.442695, %v477_v23  ;;  %v1031_v26 = vpack.c.bf16 %v1165_v21, %v1161_v18 }
 0x192   : > { %v1029_v27 = vpack.c.bf16 %v1167_v24, %v1163_v19  ;;  %1176 = vpow2.f32 %v650_v22 }
 0x193   : > { %v481_v28 = vpop.f32.mrb[18].mxu0  ;;  %1178 = vpow2.f32 %v652_v25 }
 0x194   : > { %v654_v29 = vmul.f32 1.442695, %v481_v28  ;;  %v483_v30 = vpop.f32.mrb[19].mxu0  ;;  %1030 = vmatprep.subr.bf16.mxu1 %v1029_v27  ;;  %v1169_v32 = vpop.eup %1168 }
 0x195   : > { %v656_v31 = vmul.f32 1.442695, %v483_v30  ;;  %1032 = vmatpush1.bf16.msra.mxu1 %v1031_v26  ;;  %v1171_v33 = vpop.eup %1170 }
 0x196   : > { %1180 = vpow2.f32 %v654_v29 }
 0x197   : > { %1182 = vpow2.f32 %v656_v31  ;;  %v487_v34 = vpop.f32.mrb[20].mxu0 }
 0x198   : > { %v1173_v35 = vpop.eup %1172  ;;  %v658_v36 = vmul.f32 1.442695, %v487_v34  ;;  %v489_v37 = vpop.f32.mrb[21].mxu0 }
 0x199   : > { %v1175_v38 = vpop.eup %1174  ;;  %v660_v39 = vmul.f32 1.442695, %v489_v37  ;;  %v1035_v40 = vpack.c.bf16 %v1173_v35, %v1169_v32 }
 0x19a   : > { %v1033_v41 = vpack.c.bf16 %v1175_v38, %v1171_v33  ;;  %1184 = vpow2.f32 %v658_v36 }
 0x19b   : > { %v493_v42 = vpop.f32.mrb[22].mxu0  ;;  %1186 = vpow2.f32 %v660_v39 }
 0x19c   : > { %v662_v43 = vmul.f32 1.442695, %v493_v42  ;;  %v495_v44 = vpop.f32.mrb[23].mxu0  ;;  %1034 = vmatprep.subr.bf16.mxu1 %v1033_v41  ;;  %v1177_v46 = vpop.eup %1176 }
 0x19d   : > { %v664_v45 = vmul.f32 1.442695, %v495_v44  ;;  %1036 = vmatpush1.bf16.msra.mxu1 %v1035_v40  ;;  %v1179_v47 = vpop.eup %1178 }
 0x19e   : > { %1188 = vpow2.f32 %v662_v43 }
 0x19f   : > { %1190 = vpow2.f32 %v664_v45  ;;  %v499_v48 = vpop.f32.mrb[24].mxu0 }
 0x1a0   : > { %v1181_v49 = vpop.eup %1180  ;;  %v666_v50 = vmul.f32 1.442695, %v499_v48  ;;  %v501_v51 = vpop.f32.mrb[25].mxu0 }
 0x1a1   : > { %v1183_v52 = vpop.eup %1182  ;;  %v668_v53 = vmul.f32 1.442695, %v501_v51  ;;  %v1039_v54 = vpack.c.bf16 %v1181_v49, %v1177_v46 }
 0x1a2   : > { %v1037_v55 = vpack.c.bf16 %v1183_v52, %v1179_v47  ;;  %1192 = vpow2.f32 %v666_v50 }
 0x1a3   : > { %v505_v56 = vpop.f32.mrb[26].mxu0  ;;  %1194 = vpow2.f32 %v668_v53 }
 0x1a4   : > { %v670_v57 = vmul.f32 1.442695, %v505_v56  ;;  %v507_v58 = vpop.f32.mrb[27].mxu0  ;;  %1038 = vmatprep.subr.bf16.mxu1 %v1037_v55  ;;  %v1185_v60 = vpop.eup %1184 }
 0x1a5   : > { %v672_v59 = vmul.f32 1.442695, %v507_v58  ;;  %1040 = vmatpush1.bf16.msra.mxu1 %v1039_v54  ;;  %v1187_v61 = vpop.eup %1186 }
 0x1a6   : > { %1196 = vpow2.f32 %v670_v57 }
 0x1a7   : > { %1198 = vpow2.f32 %v672_v59  ;;  %v511_v62 = vpop.f32.mrb[28].mxu0 }
 0x1a8   : > { %v1189_v63 = vpop.eup %1188  ;;  %v674_v0 = vmul.f32 1.442695, %v511_v62  ;;  %v513_v1 = vpop.f32.mrb[29].mxu0 }
 0x1a9   : > { %v1191_v2 = vpop.eup %1190  ;;  %v676_v3 = vmul.f32 1.442695, %v513_v1  ;;  %v1043_v4 = vpack.c.bf16 %v1189_v63, %v1185_v60 }
 0x1aa   : > { %v1041_v5 = vpack.c.bf16 %v1191_v2, %v1187_v61  ;;  %1200 = vpow2.f32 %v674_v0 }
 0x1ab   : > { %v517_v6 = vpop.f32.mrb[30].mxu0  ;;  %1202 = vpow2.f32 %v676_v3 }
 0x1ac   : > { %v678_v7 = vmul.f32 1.442695, %v517_v6  ;;  %v519_v8 = vpop.f32.mrb[31].mxu0  ;;  %1042 = vmatprep.subr.bf16.mxu1 %v1041_v5  ;;  %v1193_v10 = vpop.eup %1192 }
 0x1ad   : > { %v680_v9 = vmul.f32 1.442695, %v519_v8  ;;  %1044 = vmatpush1.bf16.msra.mxu1 %v1043_v4  ;;  %v1195_v11 = vpop.eup %1194 }
 0x1ae   : > { %1204 = vpow2.f32 %v678_v7 }
 0x1af   : > { %1206 = vpow2.f32 %v680_v9  ;;  %v523_v12 = vpop.f32.mrb[32].mxu0 }
 0x1b0   : > { %v1197_v13 = vpop.eup %1196  ;;  %v682_v14 = vmul.f32 1.442695, %v523_v12  ;;  %v525_v15 = vpop.f32.mrb[33].mxu0 }
 0x1b1   : > { %v1199_v16 = vpop.eup %1198  ;;  %v684_v17 = vmul.f32 1.442695, %v525_v15  ;;  %v1047_v18 = vpack.c.bf16 %v1197_v13, %v1193_v10 }
 0x1b2   : > { %v1045_v19 = vpack.c.bf16 %v1199_v16, %v1195_v11  ;;  %1208 = vpow2.f32 %v682_v14 }
 0x1b3   : > { %v529_v20 = vpop.f32.mrb[34].mxu0  ;;  %1210 = vpow2.f32 %v684_v17 }
 0x1b4   : > { %v686_v21 = vmul.f32 1.442695, %v529_v20  ;;  %v531_v22 = vpop.f32.mrb[35].mxu0  ;;  %1046 = vmatprep.subr.bf16.mxu1 %v1045_v19  ;;  %v1201_v24 = vpop.eup %1200 }
 0x1b5   : > { %v688_v23 = vmul.f32 1.442695, %v531_v22  ;;  %1048 = vmatpush1.bf16.msra.mxu1 %v1047_v18  ;;  %v1203_v25 = vpop.eup %1202 }
 0x1b6   : > { %1212 = vpow2.f32 %v686_v21 }
 0x1b7   : > { %1214 = vpow2.f32 %v688_v23  ;;  %v535_v26 = vpop.f32.mrb[36].mxu0 }
 0x1b8   : > { %v1205_v27 = vpop.eup %1204  ;;  %v690_v28 = vmul.f32 1.442695, %v535_v26  ;;  %v537_v29 = vpop.f32.mrb[37].mxu0 }
 0x1b9   : > { %v1207_v30 = vpop.eup %1206  ;;  %v692_v31 = vmul.f32 1.442695, %v537_v29  ;;  %v1051_v32 = vpack.c.bf16 %v1205_v27, %v1201_v24 }
 0x1ba   : > { %v1049_v33 = vpack.c.bf16 %v1207_v30, %v1203_v25  ;;  %1216 = vpow2.f32 %v690_v28 }
 0x1bb   : > { %v541_v34 = vpop.f32.mrb[38].mxu0  ;;  %1218 = vpow2.f32 %v692_v31 }
 0x1bc   : > { %v694_v35 = vmul.f32 1.442695, %v541_v34  ;;  %v543_v36 = vpop.f32.mrb[39].mxu0  ;;  %1050 = vmatprep.subr.bf16.mxu1 %v1049_v33  ;;  %v1209_v38 = vpop.eup %1208 }
 0x1bd   : > { %v696_v37 = vmul.f32 1.442695, %v543_v36  ;;  %1052 = vmatpush1.bf16.msra.mxu1 %v1051_v32  ;;  %v1211_v39 = vpop.eup %1210 }
 0x1be   : > { %1220 = vpow2.f32 %v694_v35 }
 0x1bf   : > { %1222 = vpow2.f32 %v696_v37  ;;  %v547_v40 = vpop.f32.mrb[40].mxu0 }
 0x1c0   : > { %v1213_v41 = vpop.eup %1212  ;;  %v698_v42 = vmul.f32 1.442695, %v547_v40  ;;  %v549_v43 = vpop.f32.mrb[41].mxu0 }
 0x1c1   : > { %v1215_v44 = vpop.eup %1214  ;;  %v700_v45 = vmul.f32 1.442695, %v549_v43  ;;  %v1055_v46 = vpack.c.bf16 %v1213_v41, %v1209_v38 }
 0x1c2   : > { %v1053_v47 = vpack.c.bf16 %v1215_v44, %v1211_v39  ;;  %1224 = vpow2.f32 %v698_v42 }
 0x1c3   : > { %v553_v48 = vpop.f32.mrb[42].mxu0  ;;  %1226 = vpow2.f32 %v700_v45 }
 0x1c4   : > { %v702_v49 = vmul.f32 1.442695, %v553_v48  ;;  %v555_v50 = vpop.f32.mrb[43].mxu0  ;;  %1054 = vmatprep.subr.bf16.mxu1 %v1053_v47  ;;  %v1217_v52 = vpop.eup %1216 }
 0x1c5   : > { %v704_v51 = vmul.f32 1.442695, %v555_v50  ;;  %1056 = vmatpush1.bf16.msra.mxu1 %v1055_v46  ;;  %v1219_v53 = vpop.eup %1218 }
 0x1c6   : > { %1228 = vpow2.f32 %v702_v49 }
 0x1c7   : > { %1230 = vpow2.f32 %v704_v51  ;;  %v559_v54 = vpop.f32.mrb[44].mxu0 }
 0x1c8   : > { %v1221_v55 = vpop.eup %1220  ;;  %v706_v56 = vmul.f32 1.442695, %v559_v54  ;;  %v561_v57 = vpop.f32.mrb[45].mxu0 }
 0x1c9   : > { %v1223_v58 = vpop.eup %1222  ;;  %v708_v59 = vmul.f32 1.442695, %v561_v57  ;;  %v1059_v60 = vpack.c.bf16 %v1221_v55, %v1217_v52 }
 0x1ca   : > { %v1057_v61 = vpack.c.bf16 %v1223_v58, %v1219_v53  ;;  %1232 = vpow2.f32 %v706_v56 }
 0x1cb   : > { %v565_v62 = vpop.f32.mrb[46].mxu0  ;;  %1234 = vpow2.f32 %v708_v59 }
 0x1cc   : > { %v710_v63 = vmul.f32 1.442695, %v565_v62  ;;  %v567_v0 = vpop.f32.mrb[47].mxu0  ;;  %1058 = vmatprep.subr.bf16.mxu1 %v1057_v61  ;;  %v1225_v2 = vpop.eup %1224 }
 0x1cd   : > { %v712_v1 = vmul.f32 1.442695, %v567_v0  ;;  %1060 = vmatpush1.bf16.msra.mxu1 %v1059_v60  ;;  %v1227_v3 = vpop.eup %1226 }
 0x1ce   : > { %1236 = vpow2.f32 %v710_v63 }
 0x1cf   : > { %1238 = vpow2.f32 %v712_v1  ;;  %v571_v4 = vpop.f32.mrb[48].mxu0 }
 0x1d0   : > { %v1229_v5 = vpop.eup %1228  ;;  %v714_v6 = vmul.f32 1.442695, %v571_v4  ;;  %v573_v7 = vpop.f32.mrb[49].mxu0 }
 0x1d1   : > { %v1231_v8 = vpop.eup %1230  ;;  %v716_v9 = vmul.f32 1.442695, %v573_v7  ;;  %v1063_v10 = vpack.c.bf16 %v1229_v5, %v1225_v2  ;;  %v833_v7 = vlaneseq }
 0x1d2   : > { %v1061_v11 = vpack.c.bf16 %v1231_v8, %v1227_v3  ;;  %1240 = vpow2.f32 %v714_v6  ;;  %v746_v6 = vld [vmem:[%s1432_s28] sm:$0x1f] }
 0x1d3   : > { %v577_v12 = vpop.f32.mrb[50].mxu0  ;;  %1242 = vpow2.f32 %v716_v9 }
 0x1d4   : > { %v718_v13 = vmul.f32 1.442695, %v577_v12  ;;  %v579_v14 = vpop.f32.mrb[51].mxu0  ;;  %1062 = vmatprep.subr.bf16.mxu1 %v1061_v11  ;;  %v1233_v16 = vpop.eup %1232 }
 0x1d5   : > { %v720_v15 = vmul.f32 1.442695, %v579_v14  ;;  %1064 = vmatpush1.bf16.msra.mxu1 %v1063_v10  ;;  %v1235_v17 = vpop.eup %1234  ;;  %v834_v10 = vshrl.u32 %v833_v7, 7 }
 0x1d6   : > { %1244 = vpow2.f32 %v718_v13 }
 0x1d7   : > { %1246 = vpow2.f32 %v720_v15  ;;  %v583_v18 = vpop.f32.mrb[52].mxu0  ;;  %v835_v11 = vsub.s32 0, %v834_v10  ;;  %v839_v12 = vsub.s32 1, %v834_v10 }
 0x1d8   : > { %v1237_v19 = vpop.eup %1236  ;;  %v722_v20 = vmul.f32 1.442695, %v583_v18  ;;  %v585_v21 = vpop.f32.mrb[53].mxu0 }
 0x1d9   : > { %v1239_v22 = vpop.eup %1238  ;;  %v724_v23 = vmul.f32 1.442695, %v585_v21  ;;  %v1067_v24 = vpack.c.bf16 %v1237_v19, %v1233_v16 }
 0x1da   : > { %v1065_v25 = vpack.c.bf16 %v1239_v22, %v1235_v17  ;;  %1248 = vpow2.f32 %v722_v20 }
 0x1db   : > { %v589_v26 = vpop.f32.mrb[54].mxu0  ;;  %1250 = vpow2.f32 %v724_v23 }
 0x1dc   : > { %v726_v27 = vmul.f32 1.442695, %v589_v26  ;;  %v591_v28 = vpop.f32.mrb[55].mxu0  ;;  %1066 = vmatprep.subr.bf16.mxu1 %v1065_v25  ;;  %v1241_v30 = vpop.eup %1240 }
 0x1dd   : > { %v728_v29 = vmul.f32 1.442695, %v591_v28  ;;  %1068 = vmatpush1.bf16.msra.mxu1 %v1067_v24  ;;  %v1243_v31 = vpop.eup %1242 }
 0x1de   : > { %1252 = vpow2.f32 %v726_v27 }
 0x1df   : > { %1254 = vpow2.f32 %v728_v29  ;;  %v595_v32 = vpop.f32.mrb[56].mxu0 }
 0x1e0   : > { %v1245_v33 = vpop.eup %1244  ;;  %v730_v34 = vmul.f32 1.442695, %v595_v32  ;;  %v597_v35 = vpop.f32.mrb[57].mxu0 }
 0x1e1   : > { %v1247_v36 = vpop.eup %1246  ;;  %v732_v37 = vmul.f32 1.442695, %v597_v35  ;;  %v1071_v38 = vpack.c.bf16 %v1245_v33, %v1241_v30 }
 0x1e2   : > { %v1069_v39 = vpack.c.bf16 %v1247_v36, %v1243_v31  ;;  %1256 = vpow2.f32 %v730_v34 }
 0x1e3   : > { %v601_v40 = vpop.f32.mrb[58].mxu0  ;;  %1258 = vpow2.f32 %v732_v37 }
 0x1e4   : > { %v734_v41 = vmul.f32 1.442695, %v601_v40  ;;  %v603_v42 = vpop.f32.mrb[59].mxu0  ;;  %1070 = vmatprep.subr.bf16.mxu1 %v1069_v39  ;;  %v1249_v44 = vpop.eup %1248 }
 0x1e5   : > { %v736_v43 = vmul.f32 1.442695, %v603_v42  ;;  %1072 = vmatpush1.bf16.msra.mxu1 %v1071_v38  ;;  %v1251_v45 = vpop.eup %1250 }
 0x1e6   : > { %1260 = vpow2.f32 %v734_v41 }
 0x1e7   : > { %1262 = vpow2.f32 %v736_v43  ;;  %v607_v46 = vpop.f32.mrb[60].mxu0 }
 0x1e8   : > { %v1253_v47 = vpop.eup %1252  ;;  %v738_v48 = vmul.f32 1.442695, %v607_v46  ;;  %v609_v49 = vpop.f32.mrb[61].mxu0 }
 0x1e9   : > { %v1255_v50 = vpop.eup %1254  ;;  %v740_v51 = vmul.f32 1.442695, %v609_v49  ;;  %v1075_v52 = vpack.c.bf16 %v1253_v47, %v1249_v44 }
 0x1ea   : > { %v1073_v53 = vpack.c.bf16 %v1255_v50, %v1251_v45  ;;  %1264 = vpow2.f32 %v738_v48 }
 0x1eb   : > { %v613_v54 = vpop.f32.mrb[62].mxu0  ;;  %1266 = vpow2.f32 %v740_v51 }
 0x1ec   : > { %v742_v55 = vmul.f32 1.442695, %v613_v54  ;;  %v615_v56 = vpop.f32.mrb[63].mxu0  ;;  %1074 = vmatprep.subr.bf16.mxu1 %v1073_v53  ;;  %v1257_v58 = vpop.eup %1256 }
 0x1ed   : > { %v744_v57 = vmul.f32 1.442695, %v615_v56  ;;  %1076 = vmatpush1.bf16.msra.mxu1 %v1075_v52  ;;  %v1259_v59 = vpop.eup %1258 }
 0x1ee   : > { %1268 = vpow2.f32 %v742_v55 }
 0x1ef   : > { %1270 = vpow2.f32 %v744_v57 }
 0x1f0   : > { %v1261_v60 = vpop.eup %1260 }
 0x1f1   : > { %v1263_v61 = vpop.eup %1262  ;;  %v1079_v62 = vpack.c.bf16 %v1261_v60, %v1257_v58 }
 0x1f2   : > { %v1077_v63 = vpack.c.bf16 %v1263_v61, %v1259_v59 }
 0x1f4   : > { %1078 = vmatprep.subr.bf16.mxu1 %v1077_v63  ;;  %v1265_v0 = vpop.eup %1264 }
 0x1f5   : > { %1080 = vmatpush1.bf16.msra.mxu1 %v1079_v62  ;;  %v1267_v1 = vpop.eup %1266 }
 0x1f8   : > { %v1269_v2 = vpop.eup %1268 }
 0x1f9   : > { %v1271_v3 = vpop.eup %1270  ;;  %v1083_v4 = vpack.c.bf16 %v1269_v2, %v1265_v0 }
 0x1fa   : > { %v1081_v5 = vpack.c.bf16 %v1271_v3, %v1267_v1 }
 0x1fc   : > { %1082 = vmatprep.subr.bf16.mxu1 %v1081_v5 }
 0x1fd   : > { %1084 = vmatpush1.bf16.msra.mxu1 %v1083_v4 }
 0x200   : > { %813 = vmatmul.mubr.f32.vlgmr.msra.gmra.mrb[0].mxu1 %v746_v6 }
 0x2d3   : > { %v814_v8 = vpop.f32.mrb[0].mxu1 }
 0x2d4   : > { %824 = vst [vmem:[#allocation2] sm:$0x1f] %v814_v8  ;;  %v816_v9 = vpop.f32.mrb[1].mxu1 }
 0x2d5   : > { %825 = vst [vmem:[#allocation2 + $0x8] sm:$0x1f] %v816_v9 }
 0x2db   : > { %v858_v28 = vld [vmem:[#allocation2] sm:$0xf] }
 0x2dc   : > { %v831_v13 = vld [vmem:[#allocation2 + $0x4] ss:$8 sm:$0x3]  ;;  %v859_v29 = vld [vmem:[#allocation2 + $0x8] sm:$0xf] }
 0x2dd   : > { %v836_v14 = vrot.slane %v831_v13, %v835_v11  ;;  %v840_v15 = vrot.slane %v831_v13, %v839_v12 }
 0x2df   : > { %v844_v16 = vsel %vm843_vm2, %v836_v14, 0.0  ;;  %v845_v17 = vsel %vm843_vm2, %v840_v15, 0.0 }
 0x2e0   : > { %v846_v18 = vadd.f32 %v845_v17, %v844_v16 }
 0x2e2   : > { %847 = vadd.xlane.f32.xlu1 %v846_v18 }
 0x36f   : > { %v848_v19 = vpop.xlane.xlu1 %847 }
 0x370   : > { %v849_v20 = vrot.slane %v848_v19, 4 }
 0x372   : > { %v850_v21 = vadd.f32 %v849_v20, %v848_v19 }
 0x374   : > { %v851_v22 = vrot.slane %v850_v21, 2 }
 0x376   : > { %v852_v23 = vadd.f32 %v851_v22, %v850_v21 }
 0x378   : > { %v853_v24 = vrot.slane %v852_v23, 1 }
 0x37a   : > { %v854_v25 = vadd.f32 %v853_v24, %v852_v23 }
 0x37c   : > { %1085 = vpush %v854_v25 }
 0x3ad   : > { %s1086_s4 = spop %1085 }
 0x3ae   : > { %v856_v26 = vstv %s1086_s4 }
 0x3af   : > { %1272 = vrcp.f32 %v856_v26 }
 0x3b9   : > { %v1273_v27 = vpop.eup %1272 }
 0x3ba   : > { %v860_v30 = vmul.f32 %v1273_v27, %v858_v28  ;;  %v861_v31 = vmul.f32 %v1273_v27, %v859_v29 }
 0x3bc   : > { %v864_v32 = vcombine.low %v860_v30, %v861_v31 }
 0x3be   : > { %866 = vst [vmem:[%s174_s8] sm:$0xff] %v864_v32 }
 0x3bf   : > { %1287 = shalt.err (!%p1284_p5)
}
 0x3c0   : > { %s1288_s27 = scalar_lea.hbm %s1509_s20, 128  ;;  %s1292_s30 = scalar_lea.hbm %s1558_s2, 256 }
 0x3c1   : > { %p1289_p6 = scmp.ne.s32.totalorder %s1509_s20, %s1288_s27  ;;  %p1293_p10 = scmp.lt.u32.totalorder %s1509_s20, %s1558_s2 }
 0x3c2   : > { %p1294_p11 = scmp.lt.u32.totalorder %s1292_s30, %s1288_s27  ;;  %p1296_p13 = scmp.lt.u32.totalorder %s1288_s27, %s1509_s20 }
 0x3c3   : > { %p1290_p7 = pnand %p1289_p6, %p1411_p4 }
 0x3c4   : > { %p1295_p12 = por %p1294_p11, %p1293_p10 }
 0x3c5   : > { %p1291_p9 = pneg %p1290_p7 }
 0x3c6   : > { %p1297_p0 = por %p1296_p13, %p1295_p12 }
 0x3c8   : > { %p1298_p1 = pnand %p1297_p0, %p1291_p9 }
 0x3ca   : > { %1301 = shalt.err (!%p1298_p1)
}
 0x3cb   : > { %1087 = dma.vmem_to_hbm [thread:$0]  (%p1411_p4), %s1511_s15, 128, %s1509_s20, %s868_s23  }
 0x3cc PF: > { %p1093_p2 = scmp.ge.s32.totalorder %s1352_s14, 2  ;;  %s894_s5 = sand.u32 1, %s1332_s9  }
 0x3cd   : > { %s895_s6 = scalar_lea.sflag [#allocation4], %s894_s5 }
 0x3ce   : > { %p1090_p3 = pnand %p1093_p2, %p1418_p8 }
 0x3d0   : > { %1327 = dma.done.wait (!%p1090_p3), %s895_s6, 128  }
 0x3d1   : > { %1329 = vsyncadd (!%p1090_p3), %s895_s6, 4294967168  ;;  %s15_s14 = sadd.s32 1, %s1352_s14   ;;  %s1561_s9 = smov %s1336_s10 }
 0x3d2   : > { %p12_p5 = scmp.ge.s32.totalorder %s15_s14, 4   ;;  %s1562_s10 = smov %s1340_s11 }
 0x3d3   : > { %s1563_s11 = smov %s1424_s22  ;;  %s1564_s12 = smov %s1348_s13 }
 0x3d4   : > { %s1565_s13 = smov %s1567_s17  ;;  %14 = sbr.rel (!%p12_p5) target bundleno = 4 (0x4), region = 72 }
 0x3db   :  { %900 = vsyncpa [#allocation4], 1 }
 0x3dc   :  { %902 = vsyncpa [#allocation4 + $0x1], 1 }

</bundles_post_ra>
